<compile_context>
chip_gen: v7x
topology: tpu7x:2x2x1
jax: 0.10.0
libtpu: 0.0.40
codegen_flags: <defaults>
</compile_context>

<pallas_src>
import functools
import math

import jax
import jax.numpy as jnp
from jax.experimental import pallas as pl
from jax.experimental.pallas import tpu as pltpu


_MAX_TILE_M = 32768        # absolute cap on lane columns per grid step
_MAX_BATCH_BLOCK = 8       # keep the unrolled per-batch loop short


def _round_up(x, mult):
    return ((x + mult - 1) // mult) * mult


def _vmem_capacity_bytes():
    """Physical VMEM of the current TPU generation (conservative fallback)."""
    try:
        cap = int(getattr(pltpu.get_tpu_info(), "vmem_capacity_bytes", 0))
        if cap > 0:
            return cap
    except Exception:
        pass
    return 64 * 1024 * 1024   # v7x per-TC VMEM — the smallest of the targets


def _plan_tiles(n, m, cin, cout, itemsize, vmem_bytes):
    """Pick (bn, tile_m): VMEM-budget-driven, lane-dense, >=2 grid steps."""
    budget = vmem_bytes // 2   # ~half of physical VMEM for pipelined tiles
    # Per output column: double-buffered x (cin) + out (cout) tiles, plus
    # ~2 live f32 (Cout, TM) temporaries inside the kernel body.
    per_col = itemsize * 2 * (cin + cout) + 4 * 2 * cout
    max_cols = (budget // per_col) // 128 * 128
    max_cols = max(128, min(max_cols, _MAX_TILE_M))

    if m <= 128:
        tile_m = m                                # block == full dim (legal)
    else:
        tile_m = min(_round_up(m, 128), max_cols)  # ragged tail is masked

    # Batch blocking: for small-M shapes fold several batches per grid step.
    bn = 1
    if n > 1 and tile_m >= m:
        bn = min(n, _MAX_BATCH_BLOCK, max(1, max_cols // max(tile_m, 1)))

    # Keep >=2 grid steps when possible (v7x has 2 TensorCores to feed).
    n_blocks = pl.cdiv(n, bn)
    m_blocks = pl.cdiv(m, tile_m)
    if n_blocks * m_blocks < 2:
        if bn > 1:
            bn = max(1, -(-n // 2))                    # >=2 batch blocks
        elif m > 128:
            tile_m = max(128, _round_up(-(-m // 2), 128))   # >=2 M blocks
    return bn, tile_m


def _linear3d_kernel(*refs, num_inputs, bn):
    # refs = (x_0, ..., x_{k-1}, w_0, ..., w_{k-1}, bias, out)
    x_refs = refs[:num_inputs]
    w_refs = refs[num_inputs:2 * num_inputs]
    b_ref = refs[2 * num_inputs]
    o_ref = refs[2 * num_inputs + 1]

    # Static unroll over the bn batches in this block; batches are independent
    # so ragged batch / ragged M blocks are safely masked at the output store.
    for b in range(bn):
        acc = None
        for x_ref, w_ref in zip(x_refs, w_refs):
            # (Cout, C_i) @ (C_i, TM) -> (Cout, TM), f32 accumulation on MXU.
            # NOTE: default precision; for very large Cin pass
            # precision=lax.Precision.HIGHEST for strict f32 parity.
            part = jnp.dot(w_ref[...], x_ref[b],
                           preferred_element_type=jnp.float32)
            acc = part if acc is None else acc + part
        acc = acc + b_ref[...]          # bias (Cout, 1) broadcasts over lanes
        o_ref[b] = acc.astype(o_ref.dtype)


@functools.partial(
    jax.jit,
    static_argnames=("channel_splits", "tile_m", "bn", "vmem_limit_bytes"))
def _linear3d_forward(xs, weight, bias, channel_splits, tile_m, bn,
                      vmem_limit_bytes):
    """xs: tuple of (N, C_i, D, H, W); weight: (Cout, Cin, 1, 1, 1); bias: (Cout,)."""
    n, _, d, h, w = xs[0].shape
    m = d * h * w
    cin = sum(channel_splits)
    cout = bias.shape[0]
    w2d = weight.reshape(cout, cin)

    # Flatten trailing spatial dims only — no transpose needed for NCDHW.
    xs_flat = tuple(xi.reshape(n, ci, m) for xi, ci in zip(xs, channel_splits))

    # Split the weight along input channels so the kernel fuses the concat.
    w_parts = []
    off = 0
    for ci in channel_splits:
        w_parts.append(w2d[:, off:off + ci])
        off += ci
    bias2d = bias.reshape(cout, 1)

    num_inputs = len(xs_flat)
    grid = (pl.cdiv(n, bn), pl.cdiv(m, tile_m))

    in_specs = (
        [pl.BlockSpec((bn, ci, tile_m), lambda ni, mi: (ni, 0, mi))
         for ci in channel_splits]
        + [pl.BlockSpec((cout, ci), lambda ni, mi: (0, 0))
           for ci in channel_splits]
        + [pl.BlockSpec((cout, 1), lambda ni, mi: (0, 0))]
    )
    out_specs = pl.BlockSpec((bn, cout, tile_m), lambda ni, mi: (ni, 0, mi))

    itemsize = jnp.dtype(xs_flat[0].dtype).itemsize
    cost = pl.CostEstimate(
        flops=2 * cin * cout * n * m,
        transcendentals=0,
        bytes_accessed=itemsize * (cin + cout) * n * m + 4 * cout * (cin + 1),
    )

    out = pl.pallas_call(
        functools.partial(_linear3d_kernel, num_inputs=num_inputs, bn=bn),
        out_shape=jax.ShapeDtypeStruct((n, cout, m), xs_flat[0].dtype),
        grid_spec=pltpu.PrefetchScalarGridSpec(
            num_scalar_prefetch=0,
            grid=grid,
            in_specs=in_specs,
            out_specs=out_specs,
        ),
        compiler_params=pltpu.CompilerParams(
            dimension_semantics=("parallel", "parallel"),
            vmem_limit_bytes=vmem_limit_bytes),
        cost_estimate=cost,
    )(*xs_flat, *w_parts, bias2d)

    return out.reshape(n, cout, d, h, w)


class Linear3d:
    """JAX/Pallas port of pytorch_retrieve Linear3d (Conv3d, kernel_size=1)."""

    def __init__(self, inputs, out_channels, key, dtype=jnp.float32):
        self.channel_splits = tuple(int(c) for c in inputs.values())
        self.in_channels = sum(self.channel_splits)
        self.out_channels = int(out_channels)
        k_w, k_b = jax.random.split(key)
        # PyTorch Conv3d weight shape: (Cout, Cin, 1, 1, 1); bias: (Cout,).
        bound = 1.0 / math.sqrt(self.in_channels)
        self.weight = jax.random.uniform(
            k_w, (self.out_channels, self.in_channels, 1, 1, 1),
            minval=-bound, maxval=bound, dtype=dtype)
        self.bias = jax.random.uniform(
            k_b, (self.out_channels,), minval=-bound, maxval=bound,
            dtype=dtype)

    def __call__(self, x):
        # x: dict of (N, C_i, D, H, W) arrays -> (N, Cout, D, H, W)
        xs = tuple(x.values())
        assert tuple(xi.shape[1] for xi in xs) == self.channel_splits, \
            "per-input channel counts do not match the module spec"
        base = (xs[0].shape[0],) + tuple(xs[0].shape[2:])
        for xi in xs:
            assert (xi.shape[0],) + tuple(xi.shape[2:]) == base, \
                "all inputs must share (N, D, H, W)"
        n, _, d, h, w = xs[0].shape
        m = d * h * w
        vmem_cap = _vmem_capacity_bytes()
        bn, tile_m = _plan_tiles(
            n, m, self.in_channels, self.out_channels,
            jnp.dtype(xs[0].dtype).itemsize, vmem_cap)
        vmem_limit = int(vmem_cap * 3 // 4)
        return _linear3d_forward(xs, self.weight, self.bias,
                                 self.channel_splits, tile_m, bn, vmem_limit)


if __name__ == "__main__":
    key = jax.random.PRNGKey(0)
    k_a, k_b, k_params = jax.random.split(key, 3)

    # Small shapes: two inputs with 3 and 5 channels -> in_channels = 8.
    inputs_spec = {"a": 3, "b": 5}
    out_channels = 16
    N, D, H, W = 2, 4, 8, 8

    x = {
        "a": jax.random.normal(k_a, (N, inputs_spec["a"], D, H, W), jnp.float32),
        "b": jax.random.normal(k_b, (N, inputs_spec["b"], D, H, W), jnp.float32),
    }

    module = Linear3d(inputs_spec, out_channels, k_params)
    out = module(x)
    out = jax.block_until_ready(out)

    # Reference check against plain-JAX pointwise conv (full-precision ref).
    inpts = jnp.concatenate(list(x.values()), axis=1)
    w2d = module.weight.reshape(out_channels, module.in_channels)
    ref = jnp.einsum("ncdhw,oc->nodhw", inpts, w2d,
                     precision=jax.lax.Precision.HIGHEST)
    ref = ref + module.bias[None, :, None, None, None]

    assert out.shape == (N, out_channels, D, H, W)
    assert jnp.allclose(out, ref, atol=1e-4, rtol=1e-4)
    print("KERNEL_OK")
</pallas_src>

<mosaic_0001>
module attributes {stable_mosaic.version = 11 : i64} {
  func.func @_linear3d_kernel(%arg0: i32, %arg1: i32, %arg2: memref<1x3x256xf32, #tpu.memory_space<vmem>>, %arg3: memref<1x5x256xf32, #tpu.memory_space<vmem>>, %arg4: memref<16x3xf32, #tpu.memory_space<vmem>>, %arg5: memref<16x5xf32, #tpu.memory_space<vmem>>, %arg6: memref<16x1xf32, #tpu.memory_space<vmem>>, %arg7: memref<1x16x256xf32, #tpu.memory_space<vmem>>) attributes {dimension_semantics = [#tpu.dimension_semantics<parallel>, #tpu.dimension_semantics<parallel>], iteration_bounds = array<i64: 2, 1>, scalar_prefetch = 0 : i64, scratch_operands = 0 : i64, tpu.core_type = #tpu.core_type<tc>, window_params = [{transform_indices = @transform_0, window_bounds = array<i64: 1, 3, 256>}, {transform_indices = @transform_1, window_bounds = array<i64: 1, 5, 256>}, {pipeline_mode = #tpu.pipeline_mode<synchronous>, transform_indices = @transform_2, window_bounds = array<i64: 16, 3>}, {pipeline_mode = #tpu.pipeline_mode<synchronous>, transform_indices = @transform_3, window_bounds = array<i64: 16, 5>}, {pipeline_mode = #tpu.pipeline_mode<synchronous>, transform_indices = @transform_4, window_bounds = array<i64: 16, 1>}, {transform_indices = @transform_5, window_bounds = array<i64: 1, 16, 256>}]} {
    %c0 = arith.constant 0 : index
    %c0_0 = arith.constant 0 : index
    %0 = vector.load %arg4[%c0, %c0_0] : memref<16x3xf32, #tpu.memory_space<vmem>>, vector<16x3xf32>
    %c0_1 = arith.constant 0 : index
    %c0_2 = arith.constant 0 : index
    %c0_3 = arith.constant 0 : index
    %1 = vector.load %arg2[%c0_1, %c0_2, %c0_3] : memref<1x3x256xf32, #tpu.memory_space<vmem>>, vector<1x3x256xf32>
    %2 = vector.shape_cast %1 : vector<1x3x256xf32> to vector<3x256xf32>
    %cst = arith.constant dense<0.000000e+00> : vector<16x256xf32>
    %3 = tpu.matmul %0, %2, %cst {dimension_numbers = #tpu.dot_dimension_numbers<[1], [0], [0], [1], [0, 0, 1, 1], [], []>} : vector<16x3xf32>, vector<3x256xf32>, vector<16x256xf32> -> vector<16x256xf32>
    %c0_4 = arith.constant 0 : index
    %c0_5 = arith.constant 0 : index
    %4 = vector.load %arg5[%c0_4, %c0_5] : memref<16x5xf32, #tpu.memory_space<vmem>>, vector<16x5xf32>
    %c0_6 = arith.constant 0 : index
    %c0_7 = arith.constant 0 : index
    %c0_8 = arith.constant 0 : index
    %5 = vector.load %arg3[%c0_6, %c0_7, %c0_8] : memref<1x5x256xf32, #tpu.memory_space<vmem>>, vector<1x5x256xf32>
    %6 = vector.shape_cast %5 : vector<1x5x256xf32> to vector<5x256xf32>
    %cst_9 = arith.constant dense<0.000000e+00> : vector<16x256xf32>
    %7 = tpu.matmul %4, %6, %cst_9 {dimension_numbers = #tpu.dot_dimension_numbers<[1], [0], [0], [1], [0, 0, 1, 1], [], []>} : vector<16x5xf32>, vector<5x256xf32>, vector<16x256xf32> -> vector<16x256xf32>
    %8 = arith.addf %3, %7 : vector<16x256xf32>
    %c0_10 = arith.constant 0 : index
    %c0_11 = arith.constant 0 : index
    %9 = vector.load %arg6[%c0_10, %c0_11] : memref<16x1xf32, #tpu.memory_space<vmem>>, vector<16x1xf32>
    %10 = vector.broadcast %9 : vector<16x1xf32> to vector<16x256xf32>
    %11 = arith.addf %8, %10 : vector<16x256xf32>
    %c0_12 = arith.constant 0 : index
    %c0_13 = arith.constant 0 : index
    %c0_14 = arith.constant 0 : index
    %12 = vector.load %arg7[%c0_12, %c0_13, %c0_14] : memref<1x16x256xf32, #tpu.memory_space<vmem>>, vector<1x16x256xf32>
    %13 = vector.shape_cast %12 : vector<1x16x256xf32> to vector<16x256xf32>
    %14 = vector.shape_cast %11 : vector<16x256xf32> to vector<1x16x256xf32>
    tpu.vector_store %arg7[%c0_12, %c0_13, %c0_14], %14 {strides = array<i32>} : memref<1x16x256xf32, #tpu.memory_space<vmem>>, vector<1x16x256xf32>,
    return
  }
  func.func @transform_0(%arg0: i32, %arg1: i32) -> (i32, i32, i32) {
    %c0_i32 = arith.constant 0 : i32
    %c0_i32_0 = arith.constant 0 : i32
    return %arg0, %c0_i32, %arg1 : i32, i32, i32
  }
  func.func @transform_1(%arg0: i32, %arg1: i32) -> (i32, i32, i32) {
    %c0_i32 = arith.constant 0 : i32
    %c0_i32_0 = arith.constant 0 : i32
    return %arg0, %c0_i32, %arg1 : i32, i32, i32
  }
  func.func @transform_2(%arg0: i32, %arg1: i32) -> (i32, i32) {
    %c0_i32 = arith.constant 0 : i32
    %c0_i32_0 = arith.constant 0 : i32
    %c0_i32_1 = arith.constant 0 : i32
    return %c0_i32, %c0_i32_0 : i32, i32
  }
  func.func @transform_3(%arg0: i32, %arg1: i32) -> (i32, i32) {
    %c0_i32 = arith.constant 0 : i32
    %c0_i32_0 = arith.constant 0 : i32
    %c0_i32_1 = arith.constant 0 : i32
    return %c0_i32, %c0_i32_0 : i32, i32
  }
  func.func @transform_4(%arg0: i32, %arg1: i32) -> (i32, i32) {
    %c0_i32 = arith.constant 0 : i32
    %c0_i32_0 = arith.constant 0 : i32
    %c0_i32_1 = arith.constant 0 : i32
    return %c0_i32, %c0_i32_0 : i32, i32
  }
  func.func @transform_5(%arg0: i32, %arg1: i32) -> (i32, i32, i32) {
    %c0_i32 = arith.constant 0 : i32
    %c0_i32_0 = arith.constant 0 : i32
    return %arg0, %c0_i32, %arg1 : i32, i32, i32
  }
}

</mosaic_0001>

<bundles_post_ra>
// kernel: _linear3d_forward.1
= control target key start
LH: loop header
LB: loop body
LE: loop exit
PB: predicated region body
PF: predicated region fallthrough
CT: control target
= control target key end

     0   :  { %s726_s18 = smov 0   ;;  %s728_s19 = smov 0   ;;  %s787_s0 = inlined_call_operand.vmem [shape: f32[2,3,256], index: 0, kind: input, shape index: {}]   ;;  %s788_s1 = inlined_call_operand.vmem [shape: f32[2,5,256], index: 1, kind: input, shape index: {}]   ;;  %s789_s2 = inlined_call_operand.vmem [shape: f32[16,3], index: 2, kind: input, shape index: {}]   ;;  %s790_s3 = inlined_call_operand.vmem [shape: f32[16,5], index: 3, kind: input, shape index: {}]   ;;  %s791_s4 = inlined_call_operand.vmem [shape: f32[16,1], index: 4, kind: input, shape index: {}]   ;;  %s792_s5 = inlined_call_operand.vmem [shape: f32[2,16,256], index: 5, kind: output, shape index: {}]  }
   0x1   :  { %s730_s20 = smov 0  }
   0x2 LB: > { %s27_s21 = sadd.s32 1, %s688_s19  ;;  %p618_p0 = scmp.ge.s32.totalorder %s692_s20, 1  ;;  %s692_s20 = sphi %s730_s20, %s15_s20   ;;  %s688_s19 = sphi %s728_s19, %s794_s19   ;;  %s684_s18 = sphi %s726_s18, %s793_s18  }
   0x3   : > { %p29_p1 = scmp.ge.s32.totalorder %s27_s21, 2  ;;  %p225_p2 = scmp.lt.s32.totalorder %s692_s20, 3 }
   0x5   : > { %s796_s21 = smov (%p29_p1, %s27_s21), 0  ;;  %p226_p3 = pnand %p618_p0, %p225_p2 }
   0x6   : > { %p271_p4 = scmp.lt.s32.totalorder (!%p226_p3), %s684_s18, 1  ;;  %v694_v0 = vmov (!%p226_p3), 0.0   ;;  %v695_v1 = vmov (!%p226_p3), 0   ;;  %v489_v2 = vld [vmem:[%s791_s4] sm:$0xff] (!%p226_p3)  ;;  %vm314_vm0 = vcmask (!%p226_p3), 1044480   ;;  %v490_v3 = vld [vmem:[%s791_s4 + $0x8] sm:$0xff] (!%p226_p3) }
   0x7   : > { %229 = sbr.rel (%p226_p3) target bundleno = 245 (0xf5), region = 40  ;;  %385 = vmatprep.mubr.f32.mxu1 (!%p226_p3), %v694_v0  ;;  %476 = vmatprep.mubr.f32.mxu0 (!%p226_p3), %v694_v0  ;;  %vm407_vm1 = vcmask (!%p226_p3), 1042432   ;;  %v303_v4 = vld [vmem:[%s790_s3] sm:$0xff] (!%p226_p3)  ;;  %vm307_vm2 = vcmask (!%p226_p3), 39936   ;;  %vm400_vm3 = vcmask (!%p226_p3), 23552   ;;  %v304_v10 = vld [vmem:[%s790_s3 + $0x8] sm:$0xff] (!%p226_p3) }
   0x8   : > { %668 = vset.pattern.permute.xlu0 (!%p226_p3), %v695_v1  ;;  %v300_v9 = vld [vmem:[%s789_s2] sm:$0xff] (!%p226_p3)  ;;  %v301_v11 = vld [vmem:[%s789_s2 + $0x8] sm:$0xff] (!%p226_p3) }
   0x9   : > { %493 = vperm.xlu0 (!%p226_p3), %668, %v489_v2  }
   0xd   : > { %498 = vperm.xlu0 (!%p226_p3), %668, %v490_v3  }
   0xe   : > { %s798_s18 = smov (!%p271_p4, %s684_s18), 1 }
   0xf   : > { %s636_s24 = sshll.u32 %s798_s18, 4  ;;  %s635_s25 = sshll.u32 %s798_s18, 3 }
  0x10   : > { %s288_s30 = scalar_lea.vmem %s788_s1, %s636_s24  ;;  %s278_s8 = scalar_lea.vmem %s787_s0, %s635_s25 }
  0x11   : > { %v306_v5 = vld [vmem:[%s288_s30 + $0x8] sm:$0x1f]  ;;  %v305_v6 = vld [vmem:[%s288_s30] sm:$0x1f]  ;;  %s637_s17 = sshll.u32 %s798_s18, 5 }
  0x12   : > { %v302_v7 = vld [vmem:[%s278_s8] sm:$0x77]  ;;  %625 = vmatprep.subr.msk.mxu1 %vm314_vm0, %v306_v5  ;;  %s298_s24 = scalar_lea.vmem %s792_s5, %s637_s17 }
  0x13   : > { %v399_v8 = vcombine.high %v302_v7, %v302_v7  ;;  %626 = vmatpush1.msk.msra.mxu1 %vm314_vm0, %v305_v6 }
  0x14   : > { %627 = vmatmul.mubr.msk.f32.vlgmr.msra.gmra.mrb[0].mxu1 %vm307_vm2, %v303_v4 }
  0x15   : > { %629 = vmatprep.subr.msk.mxu0 %vm407_vm1, %v399_v8  ;;  %391 = vmatprep.mubr.f32.mxu1 %v694_v0 }
  0x16   : > { %630 = vmatpush1.msk.msra.mxu0 %vm407_vm1, %v302_v7 }
  0x17   : > { %631 = vmatmul.mubr.msk.f32.vlgmr.msra.gmra.mrb[0].mxu0 %vm400_vm3, %v300_v9 }
  0x18   : > { %482 = vmatprep.mubr.f32.mxu0 %v694_v0  ;;  %628 = vmatmul.mubr.msk.f32.gmra.mrb[2].mxu1 %vm307_vm2, %v304_v10 }
  0x1b   : > { %632 = vmatmul.mubr.msk.f32.gmra.mrb[2].mxu0 %vm400_vm3, %v301_v11 }
  0x88   : > { %v494_v14 = vpop.permute.xlu0 %493 }
  0x8c   : > { %v499_v26 = vpop.permute.xlu0 %498 }
  0xe7   : > { %v387_v12 = vpop.f32.mrb[0].mxu1 }
  0xe8   : > { %v389_v13 = vpop.f32.mrb[1].mxu1 }
  0xea   : > { %v478_v15 = vpop.f32.mrb[0].mxu0 }
  0xeb   : > { %v479_v16 = vadd.f32 %v478_v15, %v387_v12  ;;  %v480_v17 = vpop.f32.mrb[1].mxu0  ;;  %v393_v19 = vpop.f32.mrb[2].mxu1 }
  0xec   : > { %v481_v18 = vadd.f32 %v480_v17, %v389_v13  ;;  %v395_v21 = vpop.f32.mrb[3].mxu1 }
  0xed   : > { %v501_v20 = vadd.f32 %v494_v14, %v479_v16 }
  0xee   : > { %v502_v22 = vadd.f32 %v494_v14, %v481_v18  ;;  %v484_v23 = vpop.f32.mrb[2].mxu0 }
  0xef   : > { %505 = vst [vmem:[%s298_s24] sm:$0xff] %v501_v20  ;;  %v485_v24 = vadd.f32 %v484_v23, %v393_v19  ;;  %v486_v25 = vpop.f32.mrb[3].mxu0 }
  0xf0   : > { %506 = vst [vmem:[%s298_s24 + $0x8] sm:$0xff] %v502_v22  ;;  %v487_v27 = vadd.f32 %v486_v25, %v395_v21 }
  0xf1   : > { %v503_v28 = vadd.f32 %v499_v26, %v485_v24 }
  0xf2   : > { %v504_v29 = vadd.f32 %v499_v26, %v487_v27 }
  0xf3   : > { %507 = vst [vmem:[%s298_s24 + $0x10] sm:$0xff] %v503_v28 }
  0xf4   : > { %508 = vst [vmem:[%s298_s24 + $0x18] sm:$0xff] %v504_v29 }
  0xf5 PF: > { %s15_s20 = sadd.s32 1, %s692_s20   ;;  %s793_s18 = smov %s688_s19 }
  0xf6   : > { %p12_p5 = scmp.ge.s32.totalorder %s15_s20, 4   ;;  %s794_s19 = smov %s796_s21 }
  0xf8   :  { %14 = sbr.rel (!%p12_p5) target bundleno = 2 (0x2), region = 73 }

</bundles_post_ra>
